<compile_context>
chip_gen: v5e
topology: v5e:2x2
jax: 0.10.0
libtpu: 0.0.40
codegen_flags: <defaults>
</compile_context>

<pallas_src>
import jax
import jax.numpy as jnp
from jax import lax
from jax.experimental import pallas as pl
from jax.experimental.pallas import tpu as pltpu


# --------------------------------------------------------------------------
# Kernels
# --------------------------------------------------------------------------
def _linear_kernel(x_ref, w_ref, o_ref):
    # x_ref: (tm, H)   w_ref: (tn, H)   o_ref: (tm, tn)
    acc = lax.dot_general(
        x_ref[...], w_ref[...],
        dimension_numbers=(((1,), (1,)), ((), ())),   # NT: contract over H
        preferred_element_type=jnp.float32,
    )
    o_ref[...] = acc.astype(o_ref.dtype)


def _linear_bias_kernel(x_ref, w_ref, b_ref, o_ref):
    # b_ref: (1, tn) broadcast over the tm rows, added in f32 before downcast.
    acc = lax.dot_general(
        x_ref[...], w_ref[...],
        dimension_numbers=(((1,), (1,)), ((), ())),
        preferred_element_type=jnp.float32,
    )
    o_ref[...] = (acc + b_ref[...].astype(jnp.float32)).astype(o_ref.dtype)


# --------------------------------------------------------------------------
# Helpers
# --------------------------------------------------------------------------
def _round_up(a: int, b: int) -> int:
    return -(-a // b) * b


def _vmem_budget_bytes() -> int:
    """Per-generation VMEM budget with headroom for Mosaic internal scratch."""
    cap = 128 << 20  # v5e/v6e physical
    try:
        cap = int(pltpu.get_tpu_info().vmem_capacity_bytes)  # 64 MiB on v7x
    except Exception:
        pass
    return max(16 << 20, min(int(cap * 0.85), cap - (8 << 20)))


# --------------------------------------------------------------------------
# Wrapper
# --------------------------------------------------------------------------
def shared_embedding_output_layer(x, weight, bias=None, *, tm=None, tn=None):
    """out = x @ weight.T (+ bias) with the matmul done in a Pallas TPU kernel.

    x      : [..., H]   activations (any leading dims)
    weight : [V, H]     shared embedding matrix (torch nn.Embedding.weight layout)
    bias   : [V] or None
    tm, tn : optional tile overrides (rows / vocab).  Default: auto-selected
             from the problem size and the chip's VMEM capacity.
    """
    *lead, H = x.shape
    V, Hw = weight.shape
    assert H == Hw, "hidden dim mismatch"

    x2 = x.reshape(-1, H)
    M = x2.shape[0]

    xb = x2.dtype.itemsize
    wb = weight.dtype.itemsize
    ob = jnp.dtype(x.dtype).itemsize
    bb = 0 if bias is None else jnp.dtype(bias.dtype).itemsize

    # Sublane packing for the activation dtype: 8 (f32) / 16 (bf16) / 32 (i8).
    pack = {4: 8, 2: 16, 1: 32}.get(xb, 8)
    m_aligned = _round_up(M, pack)
    v_aligned = _round_up(V, 128)

    # ---- row tile --------------------------------------------------------
    if tm is None:
        if m_aligned * H * xb <= (4 << 20):
            # Decode / small-M fast path: whole activation resident in VMEM,
            # DMA'd exactly once; grid degenerates to the vocab axis.
            tm = m_aligned
        else:
            tm = 512
    tm = _round_up(min(tm, m_aligned), pack)

    # ---- vocab tile (keep as large as VMEM allows: x traffic ~ V/tn) ------
    if tn is None:
        tn = 2048
    tn = min(_round_up(tn, 128), v_aligned)

    budget = _vmem_budget_bytes()

    def footprint(tm_, tn_):
        # 3-deep x buffers (conservative), double-buffered weight/bias/output,
        # plus a small margin for Mosaic internal scratch.
        return (3 * tm_ * H * xb + 2 * tn_ * H * wb
                + 2 * tm_ * tn_ * ob + 2 * tn_ * bb + (2 << 20))

    while footprint(tm, tn) > budget and tn > 128:
        tn = max(128, _round_up(tn // 2, 128))
    while footprint(tm, tn) > budget and tm > pack:
        tm = max(pack, _round_up(tm // 2, pack))
    # TODO(synk): if it still does not fit (huge H on v7x), tile H instead of
    #             shrinking tn further (K-reduction axis + f32 accumulator).

    v_tiles = pl.cdiv(V, tn)
    m_tiles = pl.cdiv(M, tm)
    grid = (v_tiles, m_tiles)  # vocab outer, M inner

    # ---- BlockSpecs (no padding: Pallas handles partial edge blocks) ------
    x_index = lambda j, i: (i, 0)
    x_spec = pl.BlockSpec((tm, H), x_index)
    if m_tiles >= 3 and hasattr(pl, "Buffered"):
        # Deeper pipelining only on the re-streamed operand (x); cheap VMEM.
        try:
            x_spec = pl.BlockSpec((tm, H), x_index, pipeline_mode=pl.Buffered(3))
        except TypeError:
            x_spec = pl.BlockSpec((tm, H), x_index)
    w_spec = pl.BlockSpec((tn, H), lambda j, i: (j, 0))
    o_spec = pl.BlockSpec((tm, tn), lambda j, i: (i, j))
    out_shape = jax.ShapeDtypeStruct((M, V), x.dtype)

    cost = pl.CostEstimate(
        flops=2 * M * V * H,
        transcendentals=0,
        bytes_accessed=(V * H * wb + v_tiles * M * H * xb + M * V * ob + V * bb),
    )
    vmem_limit = int(min(budget, max(footprint(tm, tn) + (4 << 20), 16 << 20)))
    cparams = pltpu.CompilerParams(
        # Outer vocab axis "parallel": dual-TC split stays on the vocab axis so
        # each core streams only its half of the embedding exactly once.
        dimension_semantics=("parallel", "arbitrary"),
        vmem_limit_bytes=vmem_limit,
    )

    if bias is None:
        out = pl.pallas_call(
            _linear_kernel,
            out_shape=out_shape,
            grid_spec=pltpu.PrefetchScalarGridSpec(
                num_scalar_prefetch=0,
                grid=grid,
                in_specs=[x_spec, w_spec],
                out_specs=o_spec,
            ),
            compiler_params=cparams,
            cost_estimate=cost,
        )(x2, weight)
    else:
        b2 = bias.reshape(1, V)
        b_spec = pl.BlockSpec((1, tn), lambda j, i: (0, j))
        out = pl.pallas_call(
            _linear_bias_kernel,
            out_shape=out_shape,
            grid_spec=pltpu.PrefetchScalarGridSpec(
                num_scalar_prefetch=0,
                grid=grid,
                in_specs=[x_spec, w_spec, b_spec],
                out_specs=o_spec,
            ),
            compiler_params=cparams,
            cost_estimate=cost,
        )(x2, weight, b2)

    return out.reshape(*lead, V)


# --------------------------------------------------------------------------
# Demo / correctness check
# --------------------------------------------------------------------------
if __name__ == "__main__":
    key = jax.random.PRNGKey(0)
    k_w, k_x, k_b = jax.random.split(key, 3)

    V, H = 256, 128
    B, S = 2, 8

    weight = jax.random.normal(k_w, (V, H), dtype=jnp.float32) * 0.02
    x = jax.random.normal(k_x, (B, S, H), dtype=jnp.float32)

    # Module default (bias=False): auto tiles -> decode fast path, single block.
    out = jax.block_until_ready(shared_embedding_output_layer(x, weight))
    ref = jnp.einsum("bsh,vh->bsv", x, weight)
    assert out.shape == (B, S, V)
    assert jnp.allclose(out, ref, atol=1e-4, rtol=1e-4)

    # bias=True, non-tile-divisible vocab, small forced tiles -> multi-block
    # grid with a partial (edge) vocab block; no jnp.pad / output slice used.
    V2 = 200
    weight2 = jax.random.normal(k_w, (V2, H), dtype=jnp.float32) * 0.02
    bias2 = jax.random.normal(k_b, (V2,), dtype=jnp.float32) * 0.1
    out2 = jax.block_until_ready(
        shared_embedding_output_layer(x, weight2, bias=bias2, tm=8, tn=128))
    ref2 = jnp.einsum("bsh,vh->bsv", x, weight2) + bias2
    assert out2.shape == (B, S, V2)
    assert jnp.allclose(out2, ref2, atol=1e-4, rtol=1e-4)

    # bf16 path (sublane packing -> tm aligned to 16), f32 accumulation inside.
    xb16 = x.astype(jnp.bfloat16)
    wb16 = weight.astype(jnp.bfloat16)
    out3 = jax.block_until_ready(shared_embedding_output_layer(xb16, wb16))
    ref3 = jnp.einsum("bsh,vh->bsv", xb16.astype(jnp.float32),
                      wb16.astype(jnp.float32))
    assert out3.shape == (B, S, V)
    assert jnp.allclose(out3.astype(jnp.float32), ref3, atol=2e-2, rtol=2e-2)

    print("KERNEL_OK")
</pallas_src>

<mosaic_0001>
module attributes {stable_mosaic.version = 11 : i64} {
  func.func @_linear_kernel(%arg0: i32, %arg1: i32, %arg2: memref<16x128xf32, #tpu.memory_space<vmem>>, %arg3: memref<256x128xf32, #tpu.memory_space<vmem>>, %arg4: memref<16x256xf32, #tpu.memory_space<vmem>>) attributes {dimension_semantics = [#tpu.dimension_semantics<parallel>, #tpu.dimension_semantics<arbitrary>], iteration_bounds = array<i64: 1, 1>, scalar_prefetch = 0 : i64, scratch_operands = 0 : i64, tpu.core_type = #tpu.core_type<tc>, window_params = [{transform_indices = @transform_0, window_bounds = array<i64: 16, 128>}, {transform_indices = @transform_1, window_bounds = array<i64: 256, 128>}, {transform_indices = @transform_2, window_bounds = array<i64: 16, 256>}]} {
    %c0 = arith.constant 0 : index
    %c0_0 = arith.constant 0 : index
    %0 = vector.load %arg2[%c0, %c0_0] : memref<16x128xf32, #tpu.memory_space<vmem>>, vector<16x128xf32>
    %c0_1 = arith.constant 0 : index
    %c0_2 = arith.constant 0 : index
    %1 = vector.load %arg3[%c0_1, %c0_2] : memref<256x128xf32, #tpu.memory_space<vmem>>, vector<256x128xf32>
    %cst = arith.constant dense<0.000000e+00> : vector<16x256xf32>
    %2 = tpu.matmul %0, %1, %cst {dimension_numbers = #tpu.dot_dimension_numbers<[1], [1], [0], [0], [0, 0, 1, 0], [], []>} : vector<16x128xf32>, vector<256x128xf32>, vector<16x256xf32> -> vector<16x256xf32>
    %c0_3 = arith.constant 0 : index
    %c0_4 = arith.constant 0 : index
    %3 = vector.load %arg4[%c0_3, %c0_4] : memref<16x256xf32, #tpu.memory_space<vmem>>, vector<16x256xf32>
    tpu.vector_store %arg4[%c0_3, %c0_4], %2 {strides = array<i32>} : memref<16x256xf32, #tpu.memory_space<vmem>>, vector<16x256xf32>,
    return
  }
  func.func @transform_0(%arg0: i32, %arg1: i32) -> (i32, i32) {
    %c0_i32 = arith.constant 0 : i32
    %c0_i32_0 = arith.constant 0 : i32
    return %arg1, %c0_i32 : i32, i32
  }
  func.func @transform_1(%arg0: i32, %arg1: i32) -> (i32, i32) {
    %c0_i32 = arith.constant 0 : i32
    %c0_i32_0 = arith.constant 0 : i32
    return %arg0, %c0_i32 : i32, i32
  }
  func.func @transform_2(%arg0: i32, %arg1: i32) -> (i32, i32) {
    %c0_i32 = arith.constant 0 : i32
    return %arg1, %arg0 : i32, i32
  }
}

</mosaic_0001>

<bundles_post_ra>
// kernel: tpu_custom_call.1
= control target key start
LH: loop header
LB: loop body
LE: loop exit
PB: predicated region body
PF: predicated region fallthrough
CT: control target
= control target key end

     0   :  { %7 = vsyncpa [#allocation3], 0  ;;  %s296_s0 = inlined_call_operand.hbm [shape: f32[16,128], index: 0, kind: input, shape index: {}]   ;;  %s297_s1 = inlined_call_operand.hbm [shape: f32[256,128], index: 1, kind: input, shape index: {}]   ;;  %s298_s2 = inlined_call_operand.hbm [shape: f32[16,256], index: 2, kind: output, shape index: {}]  }
   0x1   :  { %8 = vsyncpa [#allocation6], 0 }
   0x2   :  { %9 = vsyncpa [#allocation4], 0  ;;  %s14_s11 = sshll.u32 %s296_s0, 4  ;;  %s265_s12 = smov [#allocation2]   ;;  %s15_s11 = int_to_ptr.hbm [resolvable:$true] %s14_s11 }
   0x3   :  { %s16_s13 = sshll.u32 %s265_s12, 4  ;;  %s27_s16 = sshll.u32 %s297_s1, 4  ;;  %s17_s13 = int_to_ptr.vmem [resolvable:$true] %s16_s13  ;;  %s28_s16 = int_to_ptr.hbm [resolvable:$true] %s27_s16 }
   0x4   :  { %s266_s17 = smov 128   ;;  %s267_s18 = smov 8  }
   0x5   :  { %22 = dma.hbm_to_vmem [thread:$0]  %s15_s11, 256, %s17_s13, [#allocation3], %s266_s17, %s266_s17, %s267_s18  }
   0x6   :  { %s268_s19 = smov [#allocation5]  }
   0x7   :  { %s29_s20 = sshll.u32 %s268_s19, 4  ;;  %s30_s20 = int_to_ptr.vmem [resolvable:$true] %s29_s20 }
   0x8   :  { %35 = dma.hbm_to_vmem [thread:$0]  %s28_s16, 4096, %s30_s20, [#allocation6], %s266_s17, %s266_s17, %s267_s18  }
   0x9   :  { %259 = dma.done.wait [#allocation3], 256  }
   0xa   :  { %260 = vsyncadd [#allocation3], 4294967040 }
   0xb   :  { %261 = dma.done.wait [#allocation6], 4096  }
   0xc   :  { %262 = vsyncadd [#allocation6], 4294963200  ;;  %v61_v0 = vld [vmem:[#allocation5 + $0x78] sm:$0xff]  ;;  %v60_v2 = vld [vmem:[#allocation5 + $0x70] sm:$0xff]  ;;  %s269_s0 = smov [#allocation7]   ;;  %s134_s23 = sshll.u32 %s298_s2, 4  ;;  %s135_s23 = int_to_ptr.hbm [resolvable:$true] %s134_s23 }
   0xd   :  { %v77_v1 = vld [vmem:[#allocation5 + $0xf8] sm:$0xff]  ;;  %148 = vmatpush.xpose.msra.mxu2 %v61_v0  ;;  %v76_v3 = vld [vmem:[#allocation5 + $0xf0] sm:$0xff]  ;;  %78 = vmatpush.xpose.msra.mxu0 %v61_v0  ;;  %v59_v4 = vld [vmem:[#allocation5 + $0x68] sm:$0xff]  ;;  %s132_s1 = sshll.u32 %s269_s0, 4  ;;  %s270_s24 = smov 256   ;;  %s133_s1 = int_to_ptr.vmem [resolvable:$true] %s132_s1 }
   0xe   :  { %164 = vmatpush.xpose.msra.mxu3 %v77_v1  ;;  %101 = vmatpush.xpose.msra.mxu1 %v77_v1  ;;  %v75_v5 = vld [vmem:[#allocation5 + $0xe8] sm:$0xff]  ;;  %v58_v6 = vld [vmem:[#allocation5 + $0x60] sm:$0xff]  ;;  %v57_v8 = vld [vmem:[#allocation5 + $0x58] sm:$0xff]  ;;  %s271_s25 = smov 16  }
   0xf   :  { %v74_v7 = vld [vmem:[#allocation5 + $0xe0] sm:$0xff]  ;;  %v73_v9 = vld [vmem:[#allocation5 + $0xd8] sm:$0xff]  ;;  %v56_v10 = vld [vmem:[#allocation5 + $0x50] sm:$0xff] }
  0x10   :  { %v72_v11 = vld [vmem:[#allocation5 + $0xd0] sm:$0xff]  ;;  %v55_v12 = vld [vmem:[#allocation5 + $0x48] sm:$0xff]  ;;  %v54_v14 = vld [vmem:[#allocation5 + $0x40] sm:$0xff] }
  0x11   :  { %149 = vmatpush.xpose.msra.mxu2 %v60_v2  ;;  %79 = vmatpush.xpose.msra.mxu0 %v60_v2  ;;  %v71_v13 = vld [vmem:[#allocation5 + $0xc8] sm:$0xff]  ;;  %v70_v15 = vld [vmem:[#allocation5 + $0xc0] sm:$0xff]  ;;  %v53_v16 = vld [vmem:[#allocation5 + $0x38] sm:$0xff] }
  0x12   :  { %165 = vmatpush.xpose.msra.mxu3 %v76_v3  ;;  %102 = vmatpush.xpose.msra.mxu1 %v76_v3  ;;  %v69_v17 = vld [vmem:[#allocation5 + $0xb8] sm:$0xff]  ;;  %v52_v18 = vld [vmem:[#allocation5 + $0x30] sm:$0xff]  ;;  %v51_v20 = vld [vmem:[#allocation5 + $0x28] sm:$0xff] }
  0x13   :  { %v68_v19 = vld [vmem:[#allocation5 + $0xb0] sm:$0xff]  ;;  %v67_v21 = vld [vmem:[#allocation5 + $0xa8] sm:$0xff]  ;;  %v50_v22 = vld [vmem:[#allocation5 + $0x20] sm:$0xff] }
  0x14   :  { %v66_v23 = vld [vmem:[#allocation5 + $0xa0] sm:$0xff]  ;;  %v49_v24 = vld [vmem:[#allocation5 + $0x18] sm:$0xff]  ;;  %v48_v26 = vld [vmem:[#allocation5 + $0x10] sm:$0xff] }
  0x15   :  { %150 = vmatpush.xpose.msra.mxu2 %v59_v4  ;;  %80 = vmatpush.xpose.msra.mxu0 %v59_v4  ;;  %v65_v25 = vld [vmem:[#allocation5 + $0x98] sm:$0xff]  ;;  %v64_v27 = vld [vmem:[#allocation5 + $0x90] sm:$0xff]  ;;  %v47_v28 = vld [vmem:[#allocation5 + $0x8] sm:$0xff] }
  0x16   :  { %166 = vmatpush.xpose.msra.mxu3 %v75_v5  ;;  %103 = vmatpush.xpose.msra.mxu1 %v75_v5  ;;  %v63_v29 = vld [vmem:[#allocation5 + $0x88] sm:$0xff]  ;;  %v46_v30 = vld [vmem:[#allocation5] sm:$0xff]  ;;  %v45_v32 = vld [vmem:[#allocation2 + $0x8] sm:$0xff] }
  0x17   :  { %v62_v31 = vld [vmem:[#allocation5 + $0x80] sm:$0xff]  ;;  %v44_v33 = vld [vmem:[#allocation2] sm:$0xff] }
  0x19   :  { %151 = vmatpush.xpose.msra.mxu2 %v58_v6  ;;  %81 = vmatpush.xpose.msra.mxu0 %v58_v6 }
  0x1a   :  { %167 = vmatpush.xpose.msra.mxu3 %v74_v7  ;;  %104 = vmatpush.xpose.msra.mxu1 %v74_v7 }
  0x1d   :  { %152 = vmatpush.xpose.msra.mxu2 %v57_v8  ;;  %82 = vmatpush.xpose.msra.mxu0 %v57_v8 }
  0x1e   :  { %168 = vmatpush.xpose.msra.mxu3 %v73_v9  ;;  %105 = vmatpush.xpose.msra.mxu1 %v73_v9 }
  0x21   :  { %153 = vmatpush.xpose.msra.mxu2 %v56_v10  ;;  %83 = vmatpush.xpose.msra.mxu0 %v56_v10 }
  0x22   :  { %169 = vmatpush.xpose.msra.mxu3 %v72_v11  ;;  %106 = vmatpush.xpose.msra.mxu1 %v72_v11 }
  0x25   :  { %154 = vmatpush.xpose.msra.mxu2 %v55_v12  ;;  %84 = vmatpush.xpose.msra.mxu0 %v55_v12 }
  0x26   :  { %170 = vmatpush.xpose.msra.mxu3 %v71_v13  ;;  %107 = vmatpush.xpose.msra.mxu1 %v71_v13 }
  0x29   :  { %155 = vmatpush.xpose.msra.mxu2 %v54_v14  ;;  %85 = vmatpush.xpose.msra.mxu0 %v54_v14 }
  0x2a   :  { %171 = vmatpush.xpose.msra.mxu3 %v70_v15  ;;  %108 = vmatpush.xpose.msra.mxu1 %v70_v15 }
  0x2d   :  { %156 = vmatpush.xpose.msra.mxu2 %v53_v16  ;;  %86 = vmatpush.xpose.msra.mxu0 %v53_v16 }
  0x2e   :  { %172 = vmatpush.xpose.msra.mxu3 %v69_v17  ;;  %109 = vmatpush.xpose.msra.mxu1 %v69_v17 }
  0x31   :  { %157 = vmatpush.xpose.msra.mxu2 %v52_v18  ;;  %87 = vmatpush.xpose.msra.mxu0 %v52_v18 }
  0x32   :  { %173 = vmatpush.xpose.msra.mxu3 %v68_v19  ;;  %110 = vmatpush.xpose.msra.mxu1 %v68_v19 }
  0x35   :  { %158 = vmatpush.xpose.msra.mxu2 %v51_v20  ;;  %88 = vmatpush.xpose.msra.mxu0 %v51_v20 }
  0x36   :  { %174 = vmatpush.xpose.msra.mxu3 %v67_v21  ;;  %111 = vmatpush.xpose.msra.mxu1 %v67_v21 }
  0x39   :  { %159 = vmatpush.xpose.msra.mxu2 %v50_v22  ;;  %89 = vmatpush.xpose.msra.mxu0 %v50_v22 }
  0x3a   :  { %175 = vmatpush.xpose.msra.mxu3 %v66_v23  ;;  %112 = vmatpush.xpose.msra.mxu1 %v66_v23 }
  0x3d   :  { %160 = vmatpush.xpose.msra.mxu2 %v49_v24  ;;  %90 = vmatpush.xpose.msra.mxu0 %v49_v24 }
  0x3e   :  { %176 = vmatpush.xpose.msra.mxu3 %v65_v25  ;;  %113 = vmatpush.xpose.msra.mxu1 %v65_v25 }
  0x41   :  { %161 = vmatpush.xpose.msra.mxu2 %v48_v26  ;;  %91 = vmatpush.xpose.msra.mxu0 %v48_v26 }
  0x42   :  { %177 = vmatpush.xpose.msra.mxu3 %v64_v27  ;;  %114 = vmatpush.xpose.msra.mxu1 %v64_v27 }
  0x45   :  { %162 = vmatpush.xpose.msra.mxu2 %v47_v28  ;;  %92 = vmatpush.xpose.msra.mxu0 %v47_v28 }
  0x46   :  { %178 = vmatpush.xpose.msra.mxu3 %v63_v29  ;;  %115 = vmatpush.xpose.msra.mxu1 %v63_v29 }
  0x49   :  { %163 = vmatpush.xpose.msra.mxu2 %v46_v30  ;;  %93 = vmatpush.xpose.msra.mxu0 %v46_v30 }
  0x4a   :  { %179 = vmatpush.xpose.msra.mxu3 %v62_v31  ;;  %116 = vmatpush.xpose.msra.mxu1 %v62_v31 }
  0x4c   :  { %97 = vmatmul.f32.vlgmr.msra.gmra.mxu2 %v45_v32  ;;  %94 = vmatmul.f32.vlgmr.msra.gmra.mxu0 %v44_v33 }
  0x4d   :  { %120 = vmatmul.f32.vlgmr.msra.gmra.mxu3 %v45_v32  ;;  %117 = vmatmul.f32.vlgmr.msra.gmra.mxu1 %v44_v33 }
  0xc9   :  { %v95_v34 = vpop.f32.mrf.mxu0 }
  0xca   :  { %v118_v35 = vpop.f32.mrf.mxu1  ;;  %124 = vst [vmem:[#allocation7] sm:$0xff] %v95_v34 }
  0xcb   :  { %125 = vst [vmem:[#allocation7 + $0x8] sm:$0xff] %v118_v35 }
  0xcf   :  { %v98_v36 = vpop.f32.mrf.mxu2 }
  0xd0   :  { %v121_v37 = vpop.f32.mrf.mxu3  ;;  %126 = vst [vmem:[#allocation7 + $0x10] sm:$0xff] %v98_v36 }
  0xd1   :  { %127 = vst [vmem:[#allocation7 + $0x18] sm:$0xff] %v121_v37 }
  0xd2   :  { %140 = dma.vmem_to_hbm [thread:$0]  %s133_s1, 512, %s135_s23, [#allocation4], %s270_s24, %s270_s24, %s271_s25  }
  0xd3   :  { %263 = dma.done.wait [#allocation4], 512  }
  0xd4   :  { %264 = vsyncadd [#allocation4], 4294966784 }
  0xd5   :  { %145 = vsyncpa [#allocation3], 1 }
  0xd6   :  { %146 = vsyncpa [#allocation6], 1 }
  0xd7   :  { %147 = vsyncpa [#allocation4], 1 }

</bundles_post_ra>
